<compile_context>
chip_gen: v6e
topology: v6e:2x2x1
jax: 0.10.0
libtpu: 0.0.40
codegen_flags: <defaults>
</compile_context>

<pallas_src>
import jax
import jax.numpy as jnp
from jax.experimental import pallas as pl
from jax.experimental.pallas import tpu as pltpu

IN_DIM = 10
HID1 = 50
HID2 = 100
OUT_DIM = 1
LANE = 128      # padded hidden width (lane dim)
K_PAD = 16      # padded input feature dim (sublane multiple)

# Row offsets inside the packed parameter block.
ROW_W1 = 0                       # rows [0, 16)
ROW_W2 = K_PAD                   # rows [16, 144)
ROW_B1 = K_PAD + LANE            # 144
ROW_B2 = ROW_B1 + 1              # 145
ROW_W3 = ROW_B1 + 2              # 146
ROW_B3 = ROW_B1 + 3              # 147
PACK_ROWS = ROW_B1 + 8           # 152  (multiple of 8 sublanes)


def mlp_kernel(x_ref, p_ref, o_ref):
    # x: (B, 16) f32, zero-padded in the feature dim.
    x = x_ref[...]

    # fc1 + ReLU: (B, 16) @ (16, 128); padded rows of w1 are zero, padded
    # output columns stay exactly 0 after bias (0) + ReLU.
    w1 = p_ref[ROW_W1:ROW_W1 + K_PAD, :]
    b1 = p_ref[ROW_B1:ROW_B1 + 1, :]
    h1 = jnp.dot(x, w1, preferred_element_type=jnp.float32) + b1
    h1 = jnp.maximum(h1, 0.0)

    # fc2 + ReLU: (B, 128) @ (128, 128); padded rows/cols of w2 are zero.
    w2 = p_ref[ROW_W2:ROW_W2 + LANE, :]
    b2 = p_ref[ROW_B2:ROW_B2 + 1, :]
    h2 = jnp.dot(h1, w2, preferred_element_type=jnp.float32) + b2
    h2 = jnp.maximum(h2, 0.0)

    # fc3: single output column -> VPU multiply + lane reduction instead of a
    # 1-wide MXU matmul.  b3 scalar lives at [ROW_B3, 0].
    w3 = p_ref[ROW_W3:ROW_W3 + 1, :]                 # (1, 128)
    b3 = p_ref[ROW_B3:ROW_B3 + 1, 0:1]               # (1, 1)
    out = jnp.sum(h2 * w3, axis=-1, keepdims=True) + b3
    o_ref[...] = out


def simple_model_forward(x, packed_params):
    """x: (batch, 10) f32.  packed_params: output of pack_params(init_params(...))."""
    batch = x.shape[0]
    # One-time tiny pad so the kernel's first matmul has an aligned K=16.
    xp = jnp.pad(x, ((0, 0), (0, K_PAD - x.shape[1])))

    vmem = pl.BlockSpec(memory_space=pltpu.MemorySpace.VMEM)

    flops = 2 * batch * (K_PAD * LANE + LANE * LANE + LANE)
    bytes_accessed = (batch * K_PAD + PACK_ROWS * LANE + batch * OUT_DIM) * 4

    return pl.pallas_call(
        mlp_kernel,
        out_shape=jax.ShapeDtypeStruct((batch, OUT_DIM), jnp.float32),
        in_specs=[vmem, vmem],
        out_specs=vmem,
        cost_estimate=pl.CostEstimate(
            flops=flops, transcendentals=0, bytes_accessed=bytes_accessed),
    )(xp, packed_params)


def init_params(key):
    """Deterministic init at the true nn.Linear shapes (fc1: 10->50, fc2: 50->100, fc3: 100->1).

    Weights are stored as [in_features, out_features] (PyTorch weight.T), so the
    forward computes y = x @ W + b."""
    k1, k2, k3, k4, k5, k6 = jax.random.split(key, 6)
    w1 = jax.random.normal(k1, (IN_DIM, HID1), jnp.float32) * 0.1
    b1 = jax.random.normal(k2, (1, HID1), jnp.float32) * 0.1
    w2 = jax.random.normal(k3, (HID1, HID2), jnp.float32) * 0.1
    b2 = jax.random.normal(k4, (1, HID2), jnp.float32) * 0.1
    w3 = jax.random.normal(k5, (HID2, OUT_DIM), jnp.float32) * 0.1
    b3 = jax.random.normal(k6, (1, OUT_DIM), jnp.float32) * 0.1
    return (w1, b1, w2, b2, w3, b3)


def pack_params(params):
    """One-time layout prep: zero-pad and concatenate everything into one (152,128) block."""
    w1, b1, w2, b2, w3, b3 = params
    w1p = jnp.zeros((K_PAD, LANE), jnp.float32).at[:IN_DIM, :HID1].set(w1)
    w2p = jnp.zeros((LANE, LANE), jnp.float32).at[:HID1, :HID2].set(w2)
    small = jnp.zeros((8, LANE), jnp.float32)
    small = small.at[0, :HID1].set(b1.reshape(HID1))
    small = small.at[1, :HID2].set(b2.reshape(HID2))
    small = small.at[2, :HID2].set(w3.reshape(HID2))
    small = small.at[3, 0].set(b3.reshape(()))
    packed = jnp.concatenate([w1p, w2p, small], axis=0)   # (152, 128)
    assert packed.shape == (PACK_ROWS, LANE)
    return packed


def reference_forward(x, params):
    w1, b1, w2, b2, w3, b3 = params
    h1 = jnp.maximum(x @ w1 + b1, 0.0)
    h2 = jnp.maximum(h1 @ w2 + b2, 0.0)
    return h2 @ w3 + b3


if __name__ == "__main__":
    key = jax.random.PRNGKey(0)
    k_params, k_x = jax.random.split(key)

    params = init_params(k_params)
    packed = pack_params(params)
    x = jax.random.normal(k_x, (8, IN_DIM), jnp.float32)  # batch=8, in_features=10

    out = simple_model_forward(x, packed)
    out = jax.block_until_ready(out)

    ref = reference_forward(x, params)
    assert out.shape == (8, OUT_DIM), out.shape
    assert jnp.allclose(out, ref, atol=1e-4, rtol=1e-4), "mismatch vs reference"

    print("KERNEL_OK")
</pallas_src>

<mosaic_0001>
module attributes {stable_mosaic.version = 11 : i64} {
  func.func @mlp_kernel(%arg0: memref<8x16xf32, #tpu.memory_space<vmem>>, %arg1: memref<152x128xf32, #tpu.memory_space<vmem>>, %arg2: memref<8x1xf32, #tpu.memory_space<vmem>>) attributes {dimension_semantics = [], scalar_prefetch = 0 : i64, scratch_operands = 0 : i64, tpu.core_type = #tpu.core_type<tc>} {
    %c0 = arith.constant 0 : index
    %c0_0 = arith.constant 0 : index
    %0 = vector.load %arg0[%c0, %c0_0] : memref<8x16xf32, #tpu.memory_space<vmem>>, vector<8x16xf32>
    %c0_1 = arith.constant 0 : index
    %c0_2 = arith.constant 0 : index
    %1 = vector.load %arg1[%c0_1, %c0_2] : memref<152x128xf32, #tpu.memory_space<vmem>>, vector<16x128xf32>
    %c144 = arith.constant 144 : index
    %c0_3 = arith.constant 0 : index
    %2 = vector.load %arg1[%c144, %c0_3] : memref<152x128xf32, #tpu.memory_space<vmem>>, vector<1x128xf32>
    %cst = arith.constant dense<0.000000e+00> : vector<8x128xf32>
    %3 = tpu.matmul %0, %1, %cst {dimension_numbers = #tpu.dot_dimension_numbers<[1], [0], [0], [1], [0, 0, 1, 1], [], []>} : vector<8x16xf32>, vector<16x128xf32>, vector<8x128xf32> -> vector<8x128xf32>
    %4 = vector.broadcast %2 : vector<1x128xf32> to vector<8x128xf32>
    %5 = arith.addf %3, %4 : vector<8x128xf32>
    %cst_4 = arith.constant 0.000000e+00 : f32
    %6 = vector.broadcast %cst_4 : f32 to vector<8x128xf32>
    %7 = arith.maximumf %5, %6 : vector<8x128xf32>
    %c16 = arith.constant 16 : index
    %c0_5 = arith.constant 0 : index
    %8 = vector.load %arg1[%c16, %c0_5] : memref<152x128xf32, #tpu.memory_space<vmem>>, vector<128x128xf32>
    %c145 = arith.constant 145 : index
    %c0_6 = arith.constant 0 : index
    %9 = vector.load %arg1[%c145, %c0_6] : memref<152x128xf32, #tpu.memory_space<vmem>>, vector<1x128xf32>
    %cst_7 = arith.constant dense<0.000000e+00> : vector<8x128xf32>
    %10 = tpu.matmul %7, %8, %cst_7 {dimension_numbers = #tpu.dot_dimension_numbers<[1], [0], [0], [1], [0, 0, 1, 1], [], []>} : vector<8x128xf32>, vector<128x128xf32>, vector<8x128xf32> -> vector<8x128xf32>
    %11 = vector.broadcast %9 : vector<1x128xf32> to vector<8x128xf32>
    %12 = arith.addf %10, %11 : vector<8x128xf32>
    %cst_8 = arith.constant 0.000000e+00 : f32
    %13 = vector.broadcast %cst_8 : f32 to vector<8x128xf32>
    %14 = arith.maximumf %12, %13 : vector<8x128xf32>
    %c146 = arith.constant 146 : index
    %c0_9 = arith.constant 0 : index
    %15 = vector.load %arg1[%c146, %c0_9] : memref<152x128xf32, #tpu.memory_space<vmem>>, vector<1x128xf32>
    %c147 = arith.constant 147 : index
    %c0_10 = arith.constant 0 : index
    %16 = vector.load %arg1[%c147, %c0_10] : memref<152x128xf32, #tpu.memory_space<vmem>>, vector<1x1xf32>
    %17 = vector.broadcast %15 : vector<1x128xf32> to vector<8x128xf32>
    %18 = arith.mulf %14, %17 : vector<8x128xf32>
    %cst_11 = arith.constant dense<0.000000e+00> : vector<8xf32>
    %19 = vector.multi_reduction <add>, %18, %cst_11 [1] : vector<8x128xf32> to vector<8xf32>
    %20 = vector.shape_cast %19 : vector<8xf32> to vector<8x1xf32>
    %21 = vector.broadcast %16 : vector<1x1xf32> to vector<8x1xf32>
    %22 = arith.addf %20, %21 : vector<8x1xf32>
    %c0_12 = arith.constant 0 : index
    %c0_13 = arith.constant 0 : index
    %23 = vector.load %arg2[%c0_12, %c0_13] : memref<8x1xf32, #tpu.memory_space<vmem>>, vector<8x1xf32>
    tpu.vector_store %arg2[%c0_12, %c0_13], %22 {strides = array<i32>} : memref<8x1xf32, #tpu.memory_space<vmem>>, vector<8x1xf32>,
    return
  }
}

</mosaic_0001>

<bundles_post_ra>
// kernel: tpu_custom_call.1
= control target key start
LH: loop header
LB: loop body
LE: loop exit
PB: predicated region body
PF: predicated region fallthrough
CT: control target
= control target key end

     0   :  { %7 = vsyncpa [#allocation3], 0  ;;  %s381_s0 = inlined_call_operand.hbm [shape: f32[8,16], index: 0, kind: input, shape index: {}]   ;;  %s382_s1 = inlined_call_operand.hbm [shape: f32[152,128], index: 1, kind: input, shape index: {}]   ;;  %s383_s2 = inlined_call_operand.vmem [shape: f32[8,1], index: 2, kind: output, shape index: {}]  }
   0x1   :  { %8 = vsyncpa [#allocation5], 0  ;;  %s351_s9 = smov [#allocation2]   ;;  %s352_s11 = smov [#allocation4]  }
   0x2   :  { %s15_s10 = sshll.u32 %s351_s9, 4  ;;  %s24_s12 = sshll.u32 %s352_s11, 4  ;;  %s16_s10 = int_to_ptr.vmem [resolvable:$true] %s15_s10  ;;  %s25_s12 = int_to_ptr.vmem [resolvable:$true] %s24_s12 }
   0x3   :  { %s315_s13 = scalar_lea.vmem %s16_s10, 128  ;;  %p320_p1 = scmp.lt.s32.totalorder %s16_s10, %s16_s10 }
   0x4   :  { %p316_p0 = scmp.ne.s32.totalorder %s16_s10, %s315_s13  ;;  %p321_p2 = scmp.lt.s32.totalorder %s315_s13, %s315_s13 }
   0x6   :  { %p322_p3 = por %p321_p2, %p320_p1 }
   0x8   :  { %p323_p4 = pnand %p322_p3, %p316_p0 }
   0xa   :  { %326 = shalt.err (!%p323_p4)
}
   0xb   :  { %18 = dma.hbm_to_vmem [thread:$0]  %s381_s0, 128, %s16_s10, [#allocation3]  }
   0xc   :  { %s335_s16 = scalar_lea.vmem %s25_s12, 2432  ;;  %p340_p6 = scmp.lt.s32.totalorder %s25_s12, %s25_s12 }
   0xd   :  { %p336_p5 = scmp.ne.s32.totalorder %s25_s12, %s335_s16  ;;  %p341_p7 = scmp.lt.s32.totalorder %s335_s16, %s335_s16 }
   0xf   :  { %p342_p8 = por %p341_p7, %p340_p6 }
  0x11   :  { %p343_p9 = pnand %p342_p8, %p336_p5 }
  0x13   :  { %346 = shalt.err (!%p343_p9)
}
  0x14   :  { %s353_s17 = smov 128   ;;  %s354_s18 = smov 8  }
  0x15   :  { %30 = dma.hbm_to_vmem [thread:$0]  %s382_s1, 2432, %s25_s12, [#allocation5], %s353_s17, %s353_s17, %s354_s18  }
  0x16   :  { %347 = dma.done.wait [#allocation3], 128  }
  0x17   :  { %348 = vsyncadd [#allocation3], 4294967168 }
  0x18   :  { %349 = dma.done.wait [#allocation5], 2432  }
  0x19   :  { %350 = vsyncadd [#allocation5], 4294964864  ;;  %v355_v0 = vmov 0.0   ;;  %vm356_vm0 = vmmov 0   ;;  %v39_v1 = vld [vmem:[#allocation4 + $0x8] sm:$0xff]  ;;  %v38_v2 = vld [vmem:[#allocation4] sm:$0xff] }
  0x1a   :  { %259 = vmatprep.subr.mxu0 %v355_v0  ;;  %263 = vmatprep.mubr.msk.f32.mxu0 %vm356_vm0, %v355_v0  ;;  %v37_v3 = vld [vmem:[#allocation2] sm:$0xff]  ;;  %vm45_vm1 = vcmask 130048   ;;  %v135_v4 = vld [vmem:[#allocation4 + $0x88] sm:$0xff]  ;;  %v134_v5 = vld [vmem:[#allocation4 + $0x80] sm:$0xff]  ;;  %vm226_vm2 = vcmask 7168  }
  0x1b   :  { %266 = vmatprep.subr.mxu1 %v355_v0  ;;  %298 = vmatprep.mubr.msk.f32.mxu1 %vm356_vm0, %v355_v0  ;;  %v133_v6 = vld [vmem:[#allocation4 + $0x78] sm:$0xff]  ;;  %v132_v7 = vld [vmem:[#allocation4 + $0x70] sm:$0xff]  ;;  %v131_v8 = vld [vmem:[#allocation4 + $0x68] sm:$0xff] }
  0x1c   :  { %260 = vmatpush3.msra.mxu0 %v39_v1  ;;  %267 = vmatpush3.msra.mxu1 %v135_v4  ;;  %v130_v9 = vld [vmem:[#allocation4 + $0x60] sm:$0xff]  ;;  %v129_v10 = vld [vmem:[#allocation4 + $0x58] sm:$0xff]  ;;  %v128_v11 = vld [vmem:[#allocation4 + $0x50] sm:$0xff] }
  0x1d   :  { %261 = vmatprep.subr.mxu0 %v355_v0  ;;  %268 = vmatprep.subr.mxu1 %v355_v0  ;;  %v127_v12 = vld [vmem:[#allocation4 + $0x48] sm:$0xff]  ;;  %v126_v13 = vld [vmem:[#allocation4 + $0x40] sm:$0xff]  ;;  %v125_v14 = vld [vmem:[#allocation4 + $0x38] sm:$0xff] }
  0x1e   :  { %262 = vmatpush3.msra.mxu0 %v38_v2  ;;  %269 = vmatpush3.msra.mxu1 %v134_v5  ;;  %v124_v15 = vld [vmem:[#allocation4 + $0x30] sm:$0xff]  ;;  %v123_v16 = vld [vmem:[#allocation4 + $0x28] sm:$0xff]  ;;  %v122_v17 = vld [vmem:[#allocation4 + $0x20] sm:$0xff] }
  0x1f   :  { %264 = vmatmul.mubr.msk.f32.vlgmr.msra.gmra.mxu0 %vm45_vm1, %v37_v3  ;;  %270 = vmatprep.subr.mxu1 %v355_v0  ;;  %v121_v18 = vld [vmem:[#allocation4 + $0x18] sm:$0xff]  ;;  %v120_v19 = vld [vmem:[#allocation4 + $0x10] sm:$0xff] }
  0x20   :  { %271 = vmatpush3.msra.mxu1 %v133_v6  ;;  %v234_v20 = vld [vmem:[#allocation4 + $0x90] ss:$0 sm:$0xff]  ;;  %v236_v25 = vld [vmem:[#allocation4 + $0x91] ss:$0 sm:$0xff]  ;;  %v237_v29 = vld [vmem:[#allocation4 + $0x92] ss:$0 sm:$0xff] }
  0x21   :  { %272 = vmatprep.subr.mxu1 %v355_v0  ;;  %v238_v32 = vld [vmem:[#allocation4 + $0x93] ss:$0 sm:$0xff] }
  0x22   :  { %273 = vmatpush3.msra.mxu1 %v132_v7 }
  0x23   :  { %274 = vmatprep.subr.mxu1 %v355_v0 }
  0x24   :  { %275 = vmatpush3.msra.mxu1 %v131_v8 }
  0x25   :  { %276 = vmatprep.subr.mxu1 %v355_v0 }
  0x26   :  { %277 = vmatpush3.msra.mxu1 %v130_v9 }
  0x27   :  { %278 = vmatprep.subr.mxu1 %v355_v0 }
  0x28   :  { %279 = vmatpush3.msra.mxu1 %v129_v10 }
  0x29   :  { %280 = vmatprep.subr.mxu1 %v355_v0 }
  0x2a   :  { %281 = vmatpush3.msra.mxu1 %v128_v11 }
  0x2b   :  { %282 = vmatprep.subr.mxu1 %v355_v0 }
  0x2c   :  { %283 = vmatpush3.msra.mxu1 %v127_v12 }
  0x2d   :  { %284 = vmatprep.subr.mxu1 %v355_v0 }
  0x2e   :  { %285 = vmatpush3.msra.mxu1 %v126_v13 }
  0x2f   :  { %286 = vmatprep.subr.mxu1 %v355_v0 }
  0x30   :  { %287 = vmatpush3.msra.mxu1 %v125_v14 }
  0x31   :  { %288 = vmatprep.subr.mxu1 %v355_v0 }
  0x32   :  { %289 = vmatpush3.msra.mxu1 %v124_v15 }
  0x33   :  { %290 = vmatprep.subr.mxu1 %v355_v0 }
  0x34   :  { %291 = vmatpush3.msra.mxu1 %v123_v16 }
  0x35   :  { %292 = vmatprep.subr.mxu1 %v355_v0 }
  0x36   :  { %293 = vmatpush3.msra.mxu1 %v122_v17 }
  0x37   :  { %294 = vmatprep.subr.mxu1 %v355_v0 }
  0x38   :  { %295 = vmatpush3.msra.mxu1 %v121_v18 }
  0x39   :  { %296 = vmatprep.subr.mxu1 %v355_v0 }
  0x3a   :  { %297 = vmatpush3.msra.mxu1 %v120_v19 }
  0xdf   :  { %v115_v21 = vpop.f32.mrf.mxu0 }
  0xe0   :  { %v116_v22 = vadd.f32 %v234_v20, %v115_v21 }
  0xe1   :  { %v265_v23 = vpop.f32.mrf.mxu0 }
  0xe2   :  { %v119_v24 = vmax.f32 %v116_v22, 0.0 }
  0xe4   :  { %299 = vmatmul.mubr.f32.vlgmr.msra.gmra.mxu1 %v119_v24 }
 0x1a4   :  { %v207_v26 = vpop.f32.mrf.mxu1 }
 0x1a5   :  { %v208_v27 = vadd.f32 %v236_v25, %v207_v26 }
 0x1a6   :  { %v300_v28 = vpop.f32.mrf.mxu1 }
 0x1a7   :  { %v211_v30 = vmax.f32 %v208_v27, 0.0 }
 0x1a9   :  { %v218_v31 = vmul.f32 %v237_v29, %v211_v30 }
 0x1ab   :  { %219 = vadd.xlane.f32.xlu0 %v218_v31 }
 0x234   :  { %v220_v33 = vpop.xlane.xlu0 %219 }
 0x235   :  { %v225_v34 = vadd.f32 %v238_v32, %v220_v33 }
 0x237   :  { %227 = vst.msk [vmem:[%s383_s2] sm:$0xff] %vm226_vm2, %v225_v34 }
 0x238   :  { %232 = vsyncpa [#allocation3], 1 }
 0x239   :  { %233 = vsyncpa [#allocation5], 1 }

</bundles_post_ra>
